<compile_context>
chip_gen: v7x
topology: tpu7x:2x2x1
jax: 0.10.0
libtpu: 0.0.40
codegen_flags: <defaults>
</compile_context>

<pallas_src>
import functools

import jax
import jax.numpy as jnp
from jax.experimental import pallas as pl
from jax.experimental.pallas import tpu as pltpu


def _round_up(a, b):
    return ((a + b - 1) // b) * b


def ffn_kernel(x_ref, w1_ref, b1_ref, w2_ref, b2_ref, g_ref, beta_ref,
               o_ref, acc_ref, *, eps):
    # x_ref:  (tm, D)    w1_ref: (D, tk)   b1_ref: (1, tk)
    # w2_ref: (tk, D)    b2_ref: (1, D)    g_ref/beta_ref: (1, D)
    # o_ref:  (tm, D)    acc_ref: (tm, D) f32 scratch accumulator
    k = pl.program_id(1)

    @pl.when(k == 0)
    def _():
        acc_ref[...] = jnp.zeros_like(acc_ref)

    # Feed the MXU the native input dtype (bf16 runs at full MXU rate);
    # accumulate in f32 via preferred_element_type.
    x = x_ref[...]
    h = jnp.dot(x, w1_ref[...], preferred_element_type=jnp.float32)
    # ReLU is elementwise over the hidden dim, so per-H-slice partial sums
    # into the second matmul are exact.
    h = jnp.maximum(h + b1_ref[...].astype(jnp.float32), 0.0)

    acc_ref[...] += jnp.dot(h.astype(w2_ref.dtype), w2_ref[...],
                            preferred_element_type=jnp.float32)

    # Epilogue on the last hidden slice:
    # bias2 + dropout(eval)=identity + residual + LayerNorm, then store.
    @pl.when(k == pl.num_programs(1) - 1)
    def _():
        y = acc_ref[...] + b2_ref[...].astype(jnp.float32) + x.astype(jnp.float32)
        mean = jnp.mean(y, axis=-1, keepdims=True)
        yc = y - mean                                   # center once, reuse
        var = jnp.mean(yc * yc, axis=-1, keepdims=True)
        yn = yc * jax.lax.rsqrt(var + eps)
        yn = yn * g_ref[...].astype(jnp.float32) + beta_ref[...].astype(jnp.float32)
        o_ref[...] = yn.astype(o_ref.dtype)


def _pick_tile_h(H):
    # Largest multiple of 128 that evenly divides H, capped at 512;
    # otherwise keep the full H (small / toy hidden sizes).
    for cand in (512, 384, 256, 128):
        if H % cand == 0:
            return cand
    return H


def _pick_tile_m(M, dtype):
    sub = 16 if jnp.dtype(dtype).itemsize == 2 else 8
    if M >= 512:
        return 512
    return _round_up(M, sub)


def positionwise_feed_forward(x, w1, b1, w2, b2, gamma, beta, *,
                              eps=1e-6, tile_m=None, tile_h=None):
    """x: (B, S, D). Returns (B, S, D). Dropout is identity (eval mode)."""
    B, S, D = x.shape
    H = w1.shape[1]
    M = B * S
    x2 = x.reshape(M, D)

    tm = tile_m if tile_m is not None else _pick_tile_m(M, x.dtype)
    tk = tile_h if tile_h is not None else _pick_tile_h(H)
    assert H % tk == 0, f"hidden_size {H} must be divisible by tile_h {tk}"

    # Pad ragged row counts so the grid tiles evenly; padded rows are dropped.
    M_pad = _round_up(M, tm)
    if M_pad != M:
        x2 = jnp.pad(x2, ((0, M_pad - M), (0, 0)))

    grid = (M_pad // tm, H // tk)

    # Rough per-step VMEM footprint (double-buffered tiles + scratch + live hidden slab).
    x_bytes = jnp.dtype(x.dtype).itemsize
    w_bytes = jnp.dtype(w1.dtype).itemsize
    est = (2 * tm * D * x_bytes            # x tile (double-buffered)
           + 2 * tm * D * x_bytes          # out tile
           + 2 * D * tk * w_bytes          # W1 slab
           + 2 * tk * D * w_bytes          # W2 slab
           + 2 * (tk + 3 * D) * w_bytes    # b1 slab, b2, gamma, beta
           + tm * D * 4                    # f32 accumulator scratch
           + tm * tk * 4)                  # live hidden slab
    vmem_limit = int(min(48 * 2**20, max(16 * 2**20, 2 * est)))

    kernel = functools.partial(ffn_kernel, eps=eps)

    out2 = pl.pallas_call(
        kernel,
        out_shape=jax.ShapeDtypeStruct((M_pad, D), x.dtype),
        grid_spec=pltpu.PrefetchScalarGridSpec(
            num_scalar_prefetch=0,
            grid=grid,
            in_specs=[
                pl.BlockSpec((tm, D), lambda i, k: (i, 0)),   # x rows
                pl.BlockSpec((D, tk), lambda i, k: (0, k)),   # W1 hidden slab
                pl.BlockSpec((1, tk), lambda i, k: (0, k)),   # b1 hidden slab
                pl.BlockSpec((tk, D), lambda i, k: (k, 0)),   # W2 hidden slab
                pl.BlockSpec((1, D), lambda i, k: (0, 0)),    # b2
                pl.BlockSpec((1, D), lambda i, k: (0, 0)),    # layernorm gamma
                pl.BlockSpec((1, D), lambda i, k: (0, 0)),    # layernorm beta
            ],
            out_specs=pl.BlockSpec((tm, D), lambda i, k: (i, 0)),
            scratch_shapes=[pltpu.VMEM((tm, D), jnp.float32)],
        ),
        compiler_params=pltpu.CompilerParams(
            dimension_semantics=("parallel", "arbitrary"),
            vmem_limit_bytes=vmem_limit,
        ),
    )(x2, w1, b1, w2, b2, gamma, beta)

    if M_pad != M:
        out2 = out2[:M]
    return out2.reshape(B, S, D)


def reference(x, w1, b1, w2, b2, gamma, beta, eps=1e-6):
    # Pure-JAX reference of the PyTorch forward (dropout in eval mode).
    residual = x
    h = jnp.maximum(x @ w1 + b1[0], 0.0)
    y = h @ w2 + b2[0]
    y = y + residual
    mean = jnp.mean(y, axis=-1, keepdims=True)
    var = jnp.mean(jnp.square(y - mean), axis=-1, keepdims=True)
    y = (y - mean) / jnp.sqrt(var + eps)
    return y * gamma[0] + beta[0]


if __name__ == "__main__":
    B, S = 2, 8
    input_size = 32
    hidden_size = input_size * 2  # module default: hidden_size = input_size * 2

    key = jax.random.PRNGKey(0)
    kx, k1, kb1, k2, kb2 = jax.random.split(key, 5)

    x = jax.random.normal(kx, (B, S, input_size), dtype=jnp.float32)

    # nn.Linear(input_size, hidden_size): weight (H, D), bias (H,).
    # We store transposed weights (D, H) so the kernel does x @ W1.
    bound1 = 1.0 / jnp.sqrt(input_size)
    w1 = jax.random.uniform(k1, (input_size, hidden_size), jnp.float32, -bound1, bound1)
    b1 = jax.random.uniform(kb1, (1, hidden_size), jnp.float32, -bound1, bound1)

    bound2 = 1.0 / jnp.sqrt(hidden_size)
    w2 = jax.random.uniform(k2, (hidden_size, input_size), jnp.float32, -bound2, bound2)
    b2 = jax.random.uniform(kb2, (1, input_size), jnp.float32, -bound2, bound2)

    # LayerNorm affine params (PyTorch default init: gamma=1, beta=0).
    gamma = jnp.ones((1, input_size), dtype=jnp.float32)
    beta = jnp.zeros((1, input_size), dtype=jnp.float32)

    out = positionwise_feed_forward(x, w1, b1, w2, b2, gamma, beta)
    out = jax.block_until_ready(out)

    ref = reference(x, w1, b1, w2, b2, gamma, beta)
    assert out.shape == (B, S, input_size)
    assert jnp.allclose(out, ref, atol=1e-5, rtol=1e-5), (
        f"max abs err = {jnp.max(jnp.abs(out - ref))}")

    print("KERNEL_OK")
</pallas_src>

<mosaic_0001>
module attributes {stable_mosaic.version = 11 : i64} {
  func.func @ffn_kernel(%arg0: i32, %arg1: i32, %arg2: memref<16x32xf32, #tpu.memory_space<vmem>>, %arg3: memref<32x64xf32, #tpu.memory_space<vmem>>, %arg4: memref<1x64xf32, #tpu.memory_space<vmem>>, %arg5: memref<64x32xf32, #tpu.memory_space<vmem>>, %arg6: memref<1x32xf32, #tpu.memory_space<vmem>>, %arg7: memref<1x32xf32, #tpu.memory_space<vmem>>, %arg8: memref<1x32xf32, #tpu.memory_space<vmem>>, %arg9: memref<16x32xf32, #tpu.memory_space<vmem>>, %arg10: memref<16x32xf32, #tpu.memory_space<vmem>>) attributes {dimension_semantics = [#tpu.dimension_semantics<parallel>, #tpu.dimension_semantics<arbitrary>], iteration_bounds = array<i64: 1, 1>, scalar_prefetch = 0 : i64, scratch_operands = 1 : i64, tpu.core_type = #tpu.core_type<tc>, window_params = [{transform_indices = @transform_0, window_bounds = array<i64: 16, 32>}, {transform_indices = @transform_1, window_bounds = array<i64: 32, 64>}, {transform_indices = @transform_2, window_bounds = array<i64: 1, 64>}, {transform_indices = @transform_3, window_bounds = array<i64: 64, 32>}, {pipeline_mode = #tpu.pipeline_mode<synchronous>, transform_indices = @transform_4, window_bounds = array<i64: 1, 32>}, {pipeline_mode = #tpu.pipeline_mode<synchronous>, transform_indices = @transform_5, window_bounds = array<i64: 1, 32>}, {pipeline_mode = #tpu.pipeline_mode<synchronous>, transform_indices = @transform_6, window_bounds = array<i64: 1, 32>}, {transform_indices = @transform_7, window_bounds = array<i64: 16, 32>}]} {
    %c0_i32 = arith.constant 0 : i32
    %0 = arith.cmpi eq, %arg1, %c0_i32 : i32
    %1 = arith.extui %0 : i1 to i32
    %c0_i32_0 = arith.constant 0 : i32
    %2 = arith.cmpi ne, %1, %c0_i32_0 : i32
    scf.if %2 {
      %cst_16 = arith.constant 0.000000e+00 : f32
      %19 = vector.broadcast %cst_16 : f32 to vector<16x32xf32>
      %c0_17 = arith.constant 0 : index
      %c0_18 = arith.constant 0 : index
      %20 = vector.load %arg10[%c0_17, %c0_18] : memref<16x32xf32, #tpu.memory_space<vmem>>, vector<16x32xf32>
      tpu.vector_store %arg10[%c0_17, %c0_18], %19 {strides = array<i32>} : memref<16x32xf32, #tpu.memory_space<vmem>>, vector<16x32xf32>,
    } else {
    }
    %c0 = arith.constant 0 : index
    %c0_1 = arith.constant 0 : index
    %3 = vector.load %arg2[%c0, %c0_1] : memref<16x32xf32, #tpu.memory_space<vmem>>, vector<16x32xf32>
    %c0_2 = arith.constant 0 : index
    %c0_3 = arith.constant 0 : index
    %4 = vector.load %arg3[%c0_2, %c0_3] : memref<32x64xf32, #tpu.memory_space<vmem>>, vector<32x64xf32>
    %cst = arith.constant dense<0.000000e+00> : vector<16x64xf32>
    %5 = tpu.matmul %3, %4, %cst {dimension_numbers = #tpu.dot_dimension_numbers<[1], [0], [0], [1], [0, 0, 1, 1], [], []>} : vector<16x32xf32>, vector<32x64xf32>, vector<16x64xf32> -> vector<16x64xf32>
    %c0_4 = arith.constant 0 : index
    %c0_5 = arith.constant 0 : index
    %6 = vector.load %arg4[%c0_4, %c0_5] : memref<1x64xf32, #tpu.memory_space<vmem>>, vector<1x64xf32>
    %7 = vector.broadcast %6 : vector<1x64xf32> to vector<16x64xf32>
    %8 = arith.addf %5, %7 : vector<16x64xf32>
    %cst_6 = arith.constant 0.000000e+00 : f32
    %9 = vector.broadcast %cst_6 : f32 to vector<16x64xf32>
    %10 = arith.maximumf %8, %9 : vector<16x64xf32>
    %c0_7 = arith.constant 0 : index
    %c0_8 = arith.constant 0 : index
    %11 = vector.load %arg10[%c0_7, %c0_8] : memref<16x32xf32, #tpu.memory_space<vmem>>, vector<16x32xf32>
    %c0_9 = arith.constant 0 : index
    %c0_10 = arith.constant 0 : index
    %12 = vector.load %arg5[%c0_9, %c0_10] : memref<64x32xf32, #tpu.memory_space<vmem>>, vector<64x32xf32>
    %cst_11 = arith.constant dense<0.000000e+00> : vector<16x32xf32>
    %13 = tpu.matmul %10, %12, %cst_11 {dimension_numbers = #tpu.dot_dimension_numbers<[1], [0], [0], [1], [0, 0, 1, 1], [], []>} : vector<16x64xf32>, vector<64x32xf32>, vector<16x32xf32> -> vector<16x32xf32>
    %14 = arith.addf %11, %13 : vector<16x32xf32>
    %c0_12 = arith.constant 0 : index
    %c0_13 = arith.constant 0 : index
    %15 = vector.load %arg10[%c0_12, %c0_13] : memref<16x32xf32, #tpu.memory_space<vmem>>, vector<16x32xf32>
    tpu.vector_store %arg10[%c0_12, %c0_13], %14 {strides = array<i32>} : memref<16x32xf32, #tpu.memory_space<vmem>>, vector<16x32xf32>,
    %c0_i32_14 = arith.constant 0 : i32
    %16 = arith.cmpi eq, %arg1, %c0_i32_14 : i32
    %17 = arith.extui %16 : i1 to i32
    %c0_i32_15 = arith.constant 0 : i32
    %18 = arith.cmpi ne, %17, %c0_i32_15 : i32
    scf.if %18 {
      %c0_16 = arith.constant 0 : index
      %c0_17 = arith.constant 0 : index
      %19 = vector.load %arg10[%c0_16, %c0_17] : memref<16x32xf32, #tpu.memory_space<vmem>>, vector<16x32xf32>
      %c0_18 = arith.constant 0 : index
      %c0_19 = arith.constant 0 : index
      %20 = vector.load %arg6[%c0_18, %c0_19] : memref<1x32xf32, #tpu.memory_space<vmem>>, vector<1x32xf32>
      %21 = vector.broadcast %20 : vector<1x32xf32> to vector<16x32xf32>
      %22 = arith.addf %19, %21 : vector<16x32xf32>
      %23 = arith.addf %22, %3 : vector<16x32xf32>
      %cst_20 = arith.constant dense<0.000000e+00> : vector<16xf32>
      %24 = vector.multi_reduction <add>, %23, %cst_20 [1] : vector<16x32xf32> to vector<16xf32>
      %25 = vector.shape_cast %24 : vector<16xf32> to vector<16x1xf32>
      %cst_21 = arith.constant 3.200000e+01 : f32
      %26 = vector.broadcast %cst_21 : f32 to vector<16x1xf32>
      %27 = arith.divf %25, %26 : vector<16x1xf32>
      %28 = vector.broadcast %27 : vector<16x1xf32> to vector<16x32xf32>
      %29 = arith.subf %23, %28 : vector<16x32xf32>
      %30 = arith.mulf %29, %29 : vector<16x32xf32>
      %cst_22 = arith.constant dense<0.000000e+00> : vector<16xf32>
      %31 = vector.multi_reduction <add>, %30, %cst_22 [1] : vector<16x32xf32> to vector<16xf32>
      %32 = vector.shape_cast %31 : vector<16xf32> to vector<16x1xf32>
      %cst_23 = arith.constant 3.200000e+01 : f32
      %33 = vector.broadcast %cst_23 : f32 to vector<16x1xf32>
      %34 = arith.divf %32, %33 : vector<16x1xf32>
      %cst_24 = arith.constant 9.99999997E-7 : f32
      %35 = vector.broadcast %cst_24 : f32 to vector<16x1xf32>
      %36 = arith.addf %34, %35 : vector<16x1xf32>
      %37 = math.rsqrt %36 : vector<16x1xf32>
      %38 = vector.broadcast %37 : vector<16x1xf32> to vector<16x32xf32>
      %39 = arith.mulf %29, %38 : vector<16x32xf32>
      %c0_25 = arith.constant 0 : index
      %c0_26 = arith.constant 0 : index
      %40 = vector.load %arg7[%c0_25, %c0_26] : memref<1x32xf32, #tpu.memory_space<vmem>>, vector<1x32xf32>
      %41 = vector.broadcast %40 : vector<1x32xf32> to vector<16x32xf32>
      %42 = arith.mulf %39, %41 : vector<16x32xf32>
      %c0_27 = arith.constant 0 : index
      %c0_28 = arith.constant 0 : index
      %43 = vector.load %arg8[%c0_27, %c0_28] : memref<1x32xf32, #tpu.memory_space<vmem>>, vector<1x32xf32>
      %44 = vector.broadcast %43 : vector<1x32xf32> to vector<16x32xf32>
      %45 = arith.addf %42, %44 : vector<16x32xf32>
      %c0_29 = arith.constant 0 : index
      %c0_30 = arith.constant 0 : index
      %46 = vector.load %arg9[%c0_29, %c0_30] : memref<16x32xf32, #tpu.memory_space<vmem>>, vector<16x32xf32>
      tpu.vector_store %arg9[%c0_29, %c0_30], %45 {strides = array<i32>} : memref<16x32xf32, #tpu.memory_space<vmem>>, vector<16x32xf32>,
    } else {
    }
    return
  }
  func.func @transform_0(%arg0: i32, %arg1: i32) -> (i32, i32) {
    %c0_i32 = arith.constant 0 : i32
    %c0_i32_0 = arith.constant 0 : i32
    return %arg0, %c0_i32 : i32, i32
  }
  func.func @transform_1(%arg0: i32, %arg1: i32) -> (i32, i32) {
    %c0_i32 = arith.constant 0 : i32
    %c0_i32_0 = arith.constant 0 : i32
    return %c0_i32, %arg1 : i32, i32
  }
  func.func @transform_2(%arg0: i32, %arg1: i32) -> (i32, i32) {
    %c0_i32 = arith.constant 0 : i32
    %c0_i32_0 = arith.constant 0 : i32
    return %c0_i32, %arg1 : i32, i32
  }
  func.func @transform_3(%arg0: i32, %arg1: i32) -> (i32, i32) {
    %c0_i32 = arith.constant 0 : i32
    %c0_i32_0 = arith.constant 0 : i32
    return %arg1, %c0_i32 : i32, i32
  }
  func.func @transform_4(%arg0: i32, %arg1: i32) -> (i32, i32) {
    %c0_i32 = arith.constant 0 : i32
    %c0_i32_0 = arith.constant 0 : i32
    %c0_i32_1 = arith.constant 0 : i32
    return %c0_i32, %c0_i32_0 : i32, i32
  }
  func.func @transform_5(%arg0: i32, %arg1: i32) -> (i32, i32) {
    %c0_i32 = arith.constant 0 : i32
    %c0_i32_0 = arith.constant 0 : i32
    %c0_i32_1 = arith.constant 0 : i32
    return %c0_i32, %c0_i32_0 : i32, i32
  }
  func.func @transform_6(%arg0: i32, %arg1: i32) -> (i32, i32) {
    %c0_i32 = arith.constant 0 : i32
    %c0_i32_0 = arith.constant 0 : i32
    %c0_i32_1 = arith.constant 0 : i32
    return %c0_i32, %c0_i32_0 : i32, i32
  }
  func.func @transform_7(%arg0: i32, %arg1: i32) -> (i32, i32) {
    %c0_i32 = arith.constant 0 : i32
    %c0_i32_0 = arith.constant 0 : i32
    return %arg0, %c0_i32 : i32, i32
  }
}

</mosaic_0001>

<bundles_post_ra>
// kernel: tpu_custom_call.1
= control target key start
LH: loop header
LB: loop body
LE: loop exit
PB: predicated region body
PF: predicated region fallthrough
CT: control target
= control target key end

     0   :  { %vm31_vm0 = vcmask 261120   ;;  %s538_s0 = inlined_call_operand.vmem [shape: f32[16,32], index: 0, kind: input, shape index: {}]   ;;  %s539_s1 = inlined_call_operand.vmem [shape: f32[32,64], index: 1, kind: input, shape index: {}]   ;;  %s540_s2 = inlined_call_operand.vmem [shape: f32[1,64], index: 2, kind: input, shape index: {}]   ;;  %s541_s3 = inlined_call_operand.vmem [shape: f32[64,32], index: 3, kind: input, shape index: {}]   ;;  %s542_s4 = inlined_call_operand.vmem [shape: f32[1,32], index: 4, kind: input, shape index: {}]   ;;  %s543_s5 = inlined_call_operand.vmem [shape: f32[1,32], index: 5, kind: input, shape index: {}]   ;;  %s544_s6 = inlined_call_operand.vmem [shape: f32[1,32], index: 6, kind: input, shape index: {}]   ;;  %s545_s7 = inlined_call_operand.hbm [shape: f32[16,32], index: 7, kind: output, shape index: {}]  }
   0x1   :  { %v36_v0 = vld [vmem:[%s539_s1] sm:$0xff]  ;;  %v37_v1 = vld [vmem:[%s539_s1 + $0x8] sm:$0xff]  ;;  %v38_v2 = vld [vmem:[%s539_s1 + $0x10] sm:$0xff] }
   0x2   :  { %v360_v3 = vpack.c.bf16 %v37_v1, %v36_v0  ;;  %v39_v4 = vld [vmem:[%s539_s1 + $0x18] sm:$0xff]  ;;  %v34_v5 = vld [vmem:[%s538_s0] sm:$0xff]  ;;  %v134_v8 = vld [vmem:[%s541_s3 + $0x8] sm:$0xff] }
   0x3   :  { %v364_v6 = vpack.c.bf16 %v39_v4, %v38_v2  ;;  %338 = vmatprep.mubr.msk.f32.mxu0 %vm31_vm0, %v34_v5  ;;  %v133_v7 = vld [vmem:[%s541_s3] sm:$0xff]  ;;  %v135_v9 = vld [vmem:[%s541_s3 + $0x10] sm:$0xff]  ;;  %v136_v11 = vld [vmem:[%s541_s3 + $0x18] sm:$0xff] }
   0x4   :  { %361 = vmatprep.subr.bf16.mxu0 %v360_v3  ;;  %v368_v10 = vpack.c.bf16 %v134_v8, %v133_v7  ;;  %v372_v12 = vpack.c.bf16 %v136_v11, %v135_v9  ;;  %v137_v13 = vld [vmem:[%s541_s3 + $0x20] sm:$0xff]  ;;  %v138_v14 = vld [vmem:[%s541_s3 + $0x28] sm:$0xff] }
   0x5   :  { %363 = vmatpush3.bf16.msra.mxu0 %v360_v3 }
   0x6   :  { %12 = vsyncpa [#allocation4], 0  ;;  %365 = vmatprep.subr.bf16.mxu0 %v364_v6  ;;  %369 = vmatprep.subr.bf16.mxu1 %v368_v10  ;;  %v376_v15 = vpack.c.bf16 %v138_v14, %v137_v13  ;;  %v35_v16 = vld [vmem:[%s538_s0 + $0x8] sm:$0xff]  ;;  %v139_v17 = vld [vmem:[%s541_s3 + $0x30] sm:$0xff]  ;;  %v416_v20 = vmov 0.0   ;;  %vm141_vm1 = vcmask 523264  }
   0x7   :  { %371 = vmatpush3.bf16.msra.mxu1 %v368_v10  ;;  %v140_v18 = vld [vmem:[%s541_s3 + $0x38] sm:$0xff]  ;;  %33 = vst.msk [vmem:[#allocation2 + $0x8] sm:$0xff] %vm31_vm0, %v416_v20  ;;  %32 = vst.msk [vmem:[#allocation2] sm:$0xff] %vm31_vm0, %v416_v20  ;;  %v306_v21 = vld [vmem:[%s540_s2] ss:$0 sm:$0xff]  ;;  %s417_s9 = smov [#allocation3]  }
   0x8   :  { %373 = vmatprep.subr.bf16.mxu1 %v372_v12  ;;  %v380_v19 = vpack.c.bf16 %v140_v18, %v139_v17  ;;  %v311_v34 = vld [vmem:[%s542_s4] ss:$0 sm:$0xff]  ;;  %s295_s10 = sshll.u32 %s417_s9, 4  ;;  %s296_s10 = int_to_ptr.vmem [resolvable:$true] %s295_s10 }
   0x9   :  { %367 = vmatpush3.bf16.msra.mxu0 %v364_v6  ;;  %v312_v60 = vld [vmem:[%s543_s5] ss:$0 sm:$0xff]  ;;  %s392_s11 = scalar_lea.vmem %s296_s10, 256  ;;  %p397_p1 = scmp.lt.s32.totalorder %s296_s10, %s296_s10 }
   0xa   :  { %v313_v62 = vld [vmem:[%s544_s6] ss:$0 sm:$0xff]  ;;  %p393_p0 = scmp.ne.s32.totalorder %s296_s10, %s392_s11  ;;  %p398_p2 = scmp.lt.s32.totalorder %s392_s11, %s392_s11 }
   0xb   :  { %375 = vmatpush3.bf16.msra.mxu1 %v372_v12 }
   0xc   :  { %339 = vmatmul.mubr.msk.f32.vlgmr.msra.gmra.mrb[0].mxu0 %vm31_vm0, %v35_v16  ;;  %377 = vmatprep.subr.bf16.mxu1 %v376_v15  ;;  %p399_p3 = por %p398_p2, %p397_p1 }
   0xe   :  { %v132_v28 = vld [vmem:[#allocation2 + $0x8] sm:$0xff]  ;;  %v131_v29 = vld [vmem:[#allocation2] sm:$0xff]  ;;  %p400_p4 = pnand %p399_p3, %p393_p0 }
   0xf   :  { %379 = vmatpush3.bf16.msra.mxu1 %v376_v15 }
  0x10   :  { %381 = vmatprep.subr.bf16.mxu1 %v380_v19 }
  0x13   :  { %383 = vmatpush3.bf16.msra.mxu1 %v380_v19 }
  0xdf   :  { %v340_v22 = vpop.f32.mrb[0].mxu0 }
  0xe0   :  { %v126_v23 = vadd.f32 %v340_v22, %v306_v21  ;;  %v120_v24 = vpop.f32.mrb[1].mxu0 }
  0xe1   :  { %v121_v25 = vadd.f32 %v306_v21, %v120_v24 }
  0xe2   :  { %v130_v27 = vmax.f32 %v126_v23, 0.0 }
  0xe3   :  { %v129_v26 = vmax.f32 %v121_v25, 0.0 }
  0xe5   :  { %357 = vmatprep.mubr.msk.f32.mxu1 %vm141_vm1, %v129_v26 }
  0xe6   :  { %358 = vmatmul.mubr.msk.f32.vlgmr.msra.gmra.mrb[0].mxu1 %vm141_vm1, %v130_v27 }
 0x1b9   :  { %v359_v30 = vpop.f32.mrb[0].mxu1 }
 0x1ba   :  { %v224_v31 = vadd.f32 %v359_v30, %v132_v28  ;;  %v214_v32 = vpop.f32.mrb[1].mxu1 }
 0x1bb   :  { %v223_v33 = vadd.f32 %v214_v32, %v131_v29 }
 0x1bc   :  { %226 = vst.msk [vmem:[#allocation2 + $0x8] sm:$0xff] %vm31_vm0, %v224_v31 }
 0x1bd   :  { %225 = vst.msk [vmem:[#allocation2] sm:$0xff] %vm31_vm0, %v223_v33 }
 0x1c3   :  { %v231_v35 = vld [vmem:[#allocation2 + $0x8] sm:$0xff] }
 0x1c4   :  { %v230_v36 = vld [vmem:[#allocation2] sm:$0xff]  ;;  %v240_v38 = vadd.f32 %v311_v34, %v231_v35 }
 0x1c5   :  { %v239_v37 = vadd.f32 %v311_v34, %v230_v36 }
 0x1c6   :  { %v242_v41 = vadd.f32 %v240_v38, %v35_v16 }
 0x1c7   :  { %v241_v39 = vadd.f32 %v239_v37, %v34_v5 }
 0x1c8   :  { %v246_v42 = vsel %vm31_vm0, %v242_v41, 0.0 }
 0x1c9   :  { %v243_v40 = vsel %vm31_vm0, %v241_v39, 0.0 }
 0x1ca   :  { %244 = vadd.xlane.f32.xlu0 %v243_v40 }
 0x1ce   :  { %247 = vadd.xlane.f32.xlu0 %v246_v42 }
 0x257   :  { %v245_v43 = vpop.xlane.xlu0 %244 }
 0x258   :  { %v250_v44 = vmul.f32 0.03125, %v245_v43 }
 0x25a   :  { %v252_v45 = vsub.f32 %v241_v39, %v250_v44 }
 0x25b   :  { %v248_v46 = vpop.xlane.xlu0 %247 }
 0x25c   :  { %v251_v47 = vmul.f32 0.03125, %v248_v46  ;;  %v254_v48 = vmul.f32 %v252_v45, %v252_v45 }
 0x25e   :  { %v253_v49 = vsub.f32 %v242_v41, %v251_v47  ;;  %v256_v50 = vsel %vm31_vm0, %v254_v48, 0.0 }
 0x25f   :  { %257 = vadd.xlane.f32.xlu1 %v256_v50 }
 0x260   :  { %v255_v51 = vmul.f32 %v253_v49, %v253_v49 }
 0x262   :  { %v259_v52 = vsel %vm31_vm0, %v255_v51, 0.0 }
 0x263   :  { %260 = vadd.xlane.f32.xlu1 %v259_v52 }
 0x2ec   :  { %v258_v53 = vpop.xlane.xlu1 %257 }
 0x2ed   :  { %v262_v54 = vmul.f32 0.03125, %v258_v53 }
 0x2ef   :  { %v264_v55 = vadd.f32 1e-06, %v262_v54 }
 0x2f0   :  { %v261_v56 = vpop.xlane.xlu1 %260 }
 0x2f1   :  { %388 = vrsqrt.f32 %v264_v55  ;;  %v263_v57 = vmul.f32 0.03125, %v261_v56 }
 0x2f3   :  { %v265_v58 = vadd.f32 1e-06, %v263_v57 }
 0x2f5   :  { %390 = vrsqrt.f32 %v265_v58 }
 0x2fb   :  { %v389_v59 = vpop.eup %388 }
 0x2fc   :  { %v268_v61 = vmul.f32 %v389_v59, %v252_v45 }
 0x2fe   :  { %v277_v63 = vmul.f32 %v312_v60, %v268_v61 }
 0x2ff   :  { %v391_v0 = vpop.eup %390 }
 0x300   :  { %v269_v1 = vmul.f32 %v391_v0, %v253_v49  ;;  %v286_v2 = vadd.f32 %v313_v62, %v277_v63 }
 0x302   :  { %v278_v3 = vmul.f32 %v312_v60, %v269_v1  ;;  %288 = vst.msk [vmem:[#allocation3] sm:$0xff] %vm31_vm0, %v286_v2 }
 0x304   :  { %v287_v4 = vadd.f32 %v313_v62, %v278_v3 }
 0x306   :  { %289 = vst.msk [vmem:[#allocation3 + $0x8] sm:$0xff] %vm31_vm0, %v287_v4 }
 0x307   :  { %403 = shalt.err (!%p400_p4)
}
 0x308   :  { %s404_s12 = scalar_lea.hbm %s545_s7, 256 }
 0x309   :  { %p405_p5 = scmp.ne.s32.totalorder %s545_s7, %s404_s12  ;;  %p408_p6 = scmp.lt.u32.totalorder %s404_s12, %s545_s7 }
 0x30b   :  { %p410_p7 = pnand %p408_p6, %p405_p5 }
 0x30d   :  { %413 = shalt.err (!%p410_p7)
}
 0x30e   :  { %s418_s1 = smov 128   ;;  %s419_s17 = smov 8  }
 0x30f   :  { %301 = dma.vmem_to_hbm [thread:$0]  %s296_s10, 256, %s545_s7, [#allocation4], %s418_s1, %s418_s1, %s419_s17  }
 0x310   :  { %414 = dma.done.wait [#allocation4], 256  }
 0x311   :  { %415 = vsyncadd [#allocation4], 4294967040 }
 0x312   :  { %305 = vsyncpa [#allocation4], 1 }

</bundles_post_ra>
